<compile_context>
chip_gen: v7x
topology: tpu7x:2x2x1
jax: 0.10.0
libtpu: 0.0.40
codegen_flags: <defaults>
</compile_context>

<pallas_src>
import jax
import jax.numpy as jnp
from jax.experimental import pallas as pl
from jax.experimental.pallas import tpu as pltpu


def _round_up(x, m):
    return ((x + m - 1) // m) * m


def _largest_aligned_divisor(dim, cap, align):
    """Largest multiple of `align` that divides `dim` and is <= cap.

    `dim` must itself be a multiple of `align`.
    """
    cap = max(align, min(cap, dim))
    t = (cap // align) * align
    while t > align:
        if dim % t == 0:
            return t
        t -= align
    return align


# ----------------------------------------------------------------------------
# Tiny path: whole problem resident in VMEM, zero-dim grid (no pipelining).
# ----------------------------------------------------------------------------
def _linear_resident_kernel(x_ref, w_ref, b_ref, o_ref):
    o_ref[...] = (
        jnp.dot(x_ref[...], w_ref[...], preferred_element_type=jnp.float32)
        + b_ref[...]
    )


def _pallas_linear_resident(x, w, b):
    m, k = x.shape
    n = w.shape[1]
    cost = pl.CostEstimate(
        flops=2 * m * k * n,
        transcendentals=0,
        bytes_accessed=4 * (m * k + k * n + n + m * n),
    )
    return pl.pallas_call(
        _linear_resident_kernel,
        out_shape=jax.ShapeDtypeStruct((m, n), jnp.float32),
        in_specs=[
            pl.BlockSpec(memory_space=pltpu.MemorySpace.VMEM),
            pl.BlockSpec(memory_space=pltpu.MemorySpace.VMEM),
            pl.BlockSpec(memory_space=pltpu.MemorySpace.VMEM),
        ],
        out_specs=pl.BlockSpec(memory_space=pltpu.MemorySpace.VMEM),
        cost_estimate=cost,
    )(x, w, b)


# ----------------------------------------------------------------------------
# Mid-size path: 1-D grid over M; W/b grid-invariant (resident after the first
# fetch), x streaming overlaps the MXU. K and N must be 128-multiples.
# ----------------------------------------------------------------------------
def _linear_rowstream_kernel(x_ref, w_ref, b_ref, o_ref):
    o_ref[...] = (
        jnp.dot(x_ref[...], w_ref[...], preferred_element_type=jnp.float32)
        + b_ref[...]
    )


def _pallas_linear_rowstream(x, w, b, *, tm_cap=256):
    m, k = x.shape
    n = w.shape[1]
    mp = _round_up(m, 8)
    tm = _largest_aligned_divisor(mp, tm_cap, 8)
    if mp != m:
        x = jnp.pad(x, ((0, mp - m), (0, 0)))
    grid = (mp // tm,)

    vmem_bytes = 4 * (2 * tm * k + 2 * k * n + 2 * n + 2 * tm * n) + (4 << 20)
    cost = pl.CostEstimate(
        flops=2 * mp * k * n,
        transcendentals=0,
        bytes_accessed=4 * (mp * k + k * n + n + mp * n),
    )
    out = pl.pallas_call(
        _linear_rowstream_kernel,
        out_shape=jax.ShapeDtypeStruct((mp, n), jnp.float32),
        grid_spec=pltpu.PrefetchScalarGridSpec(
            num_scalar_prefetch=0,
            grid=grid,
            in_specs=[
                pl.BlockSpec((tm, k), lambda i: (i, 0)),
                pl.BlockSpec((k, n), lambda i: (0, 0)),
                pl.BlockSpec((1, n), lambda i: (0, 0)),
            ],
            out_specs=pl.BlockSpec((tm, n), lambda i: (i, 0)),
        ),
        compiler_params=pltpu.CompilerParams(
            dimension_semantics=("parallel",),
            vmem_limit_bytes=min(max(vmem_bytes, 32 << 20), 48 << 20),
        ),
        cost_estimate=cost,
    )(x, w, b)
    return out[:m] if mp != m else out


# ----------------------------------------------------------------------------
# Large path: M/N/K grid. No scratch — the f32 output block is resident across
# the (innermost, "arbitrary") K axis; it is initialized with the broadcast
# bias at k == 0 and accumulated into directly.
# ----------------------------------------------------------------------------
def _linear_tiled_kernel(x_ref, w_ref, b_ref, o_ref):
    kk = pl.program_id(2)

    @pl.when(kk == 0)
    def _init():
        o_ref[...] = jnp.broadcast_to(b_ref[...], o_ref.shape)

    o_ref[...] += jnp.dot(
        x_ref[...], w_ref[...], preferred_element_type=jnp.float32
    )


def _pallas_linear_tiled(x, w, b, *, tm_cap=512, tn_cap=512, tk_cap=512):
    m, k = x.shape
    n = w.shape[1]

    # K / N are normally already 128-aligned (padded once at init); pad here
    # only as a standalone-use fallback — never to tile granularity.
    kp = _round_up(k, 128)
    np_ = _round_up(n, 128)
    if kp != k:
        x = jnp.pad(x, ((0, 0), (0, kp - k)))
        w = jnp.pad(w, ((0, kp - k), (0, 0)))
    if np_ != n:
        w = jnp.pad(w, ((0, 0), (0, np_ - n)))
        b = jnp.pad(b, ((0, 0), (0, np_ - n)))

    # Tiles divide the 128-aligned dims exactly => zero wasted FLOPs/bytes.
    tk = kp if kp <= tk_cap else _largest_aligned_divisor(kp, tk_cap, 128)
    tn = np_ if np_ <= 768 else _largest_aligned_divisor(np_, tn_cap, 128)

    mp8 = _round_up(m, 8)
    tm = _largest_aligned_divisor(mp8, tm_cap, 8)
    # Megacore (v7x has 2 TCs): keep >= 2 blocks on a "parallel" axis.
    if mp8 // tm == 1 and np_ // tn == 1 and mp8 >= 16:
        tm = _largest_aligned_divisor(mp8, max(tm // 2, 8), 8)
    mp = _round_up(m, tm)
    if mp != m:
        x = jnp.pad(x, ((0, mp - m), (0, 0)))

    grid = (mp // tm, np_ // tn, kp // tk)

    # Honest traffic estimate: x re-read per N-block, W re-read per M-block.
    bytes_accessed = 4 * (
        mp * kp * grid[1] + kp * np_ * grid[0] + np_ * grid[0] + mp * np_
    )
    cost = pl.CostEstimate(
        flops=2 * mp * kp * np_, transcendentals=0, bytes_accessed=bytes_accessed
    )
    # Double-buffered inputs + (double-buffered) resident f32 output block.
    vmem_bytes = 4 * (2 * tm * tk + 2 * tk * tn + 2 * tn + 2 * tm * tn) + (4 << 20)

    out = pl.pallas_call(
        _linear_tiled_kernel,
        out_shape=jax.ShapeDtypeStruct((mp, np_), jnp.float32),
        grid_spec=pltpu.PrefetchScalarGridSpec(
            num_scalar_prefetch=0,
            grid=grid,
            in_specs=[
                pl.BlockSpec((tm, tk), lambda i, j, kk: (i, kk)),
                pl.BlockSpec((tk, tn), lambda i, j, kk: (kk, j)),
                pl.BlockSpec((1, tn), lambda i, j, kk: (0, j)),
            ],
            out_specs=pl.BlockSpec((tm, tn), lambda i, j, kk: (i, j)),
        ),
        compiler_params=pltpu.CompilerParams(
            dimension_semantics=("parallel", "parallel", "arbitrary"),
            vmem_limit_bytes=min(max(vmem_bytes, 32 << 20), 48 << 20),
        ),
        cost_estimate=cost,
    )(x, w, b)
    return out[:m, :n]


# Dispatch thresholds (conservative for v7x's 64 MiB VMEM / v5e's 16 MiB
# scoped default; the gridded paths set vmem_limit_bytes explicitly).
_RESIDENT_VMEM_BUDGET = 2 * 1024 * 1024      # zero-grid path: tiny problems
_WEIGHT_RESIDENT_BUDGET = 8 * 1024 * 1024    # row-stream path: W fits in VMEM


def _pallas_linear(x, w, b):
    m, k = x.shape
    n = w.shape[1]
    total_bytes = 4 * (m * k + k * n + n + m * n)
    weight_bytes = 4 * (k * n + n)
    if total_bytes <= _RESIDENT_VMEM_BUDGET and m <= 256:
        return _pallas_linear_resident(x, w, b)
    if weight_bytes <= _WEIGHT_RESIDENT_BUDGET and k <= 2048:
        return _pallas_linear_rowstream(x, w, b)
    return _pallas_linear_tiled(x, w, b)


class FunctionApproximator:
    """JAX/Pallas port of the PyTorch FunctionApproximator base class,
    concretized as a linear function approximator."""

    def __init__(self, inputs, outputs, Remove=False):
        self.inputs = self._squeeze_trivial_dims(jnp.asarray(inputs))
        self.outputs = self._squeeze_trivial_dims(jnp.asarray(outputs))
        self.Remove = Remove

        d_in = int(self.inputs.shape[-1]) if self.inputs.ndim > 0 else 1
        d_out = int(self.outputs.shape[-1]) if self.outputs.ndim > 0 else 1
        self.d_in = d_in
        self.d_out = d_out

        # Deterministic synthetic parameters (no checkpoint loading).
        kw, kb = jax.random.split(jax.random.PRNGKey(42))
        self.W = jax.random.normal(kw, (d_in, d_out), dtype=jnp.float32) * 0.1
        self.b = jax.random.normal(kb, (1, d_out), dtype=jnp.float32) * 0.1

        # One-time 128-multiple padding of BOTH weight dims:
        #   * padded K rows are zero (match the zero-padded x K columns),
        #   * padded N cols give a lane-dense, unmasked output store path.
        # Done at init so the forward pass never re-pads W/b in HBM.
        self._d_in_p = _round_up(d_in, 128)
        self._d_out_p = _round_up(d_out, 128)
        self._Wp = jnp.pad(
            self.W, ((0, self._d_in_p - d_in), (0, self._d_out_p - d_out))
        )
        self._bp = jnp.pad(self.b, ((0, 0), (0, self._d_out_p - d_out)))

    @staticmethod
    def _squeeze_trivial_dims(tensor):
        if tensor.ndim == 2 and (tensor.shape[0] == 1 or tensor.shape[1] == 1):
            tensor = jnp.squeeze(tensor)
        return tensor

    @staticmethod
    def _check_and_convert_tensor(x):
        x = jnp.asarray(x)
        if x.ndim == 0:
            x = x[None]  # mirrors tr.tensor([x]) for scalar inputs
        if x.dtype != jnp.float32:
            x = x.astype(jnp.float32)
        return x

    def Forward(self, x):
        x2d = x if x.ndim == 2 else x.reshape(1, -1)
        if x2d.shape[1] != self.d_in:
            raise ValueError(
                f"expected {self.d_in} input features, got {x2d.shape[1]}"
            )
        if x2d.shape[1] != self._d_in_p:
            x2d = jnp.pad(x2d, ((0, 0), (0, self._d_in_p - x2d.shape[1])))
        y_padded = _pallas_linear(x2d, self._Wp, self._bp)
        return y_padded[:, : self.d_out]

    def remove(self, x, result):
        # TODO(synk): abstract `remove` has no defined semantics; identity
        # here (Remove=False behaviour).
        return result

    def __call__(self, x):
        x = self._check_and_convert_tensor(x)
        result = self.Forward(x)
        result = self.remove(x, result)
        return result.flatten()


if __name__ == "__main__":
    key = jax.random.PRNGKey(0)
    kx, ki, ko = jax.random.split(key, 3)

    batch, d_in, d_out = 8, 32, 16
    # `inputs` / `outputs` sample tensors (with a trivial leading dim to
    # exercise _squeeze_trivial_dims, as in the reference module).
    inputs = jax.random.normal(ki, (1, d_in), dtype=jnp.float32)
    outputs = jax.random.normal(ko, (1, d_out), dtype=jnp.float32)

    fa = FunctionApproximator(inputs, outputs, Remove=False)

    x = jax.random.normal(kx, (batch, d_in), dtype=jnp.float32)
    y = fa(x)
    jax.block_until_ready(y)

    # Cross-check against plain-JAX reference (unpadded parameters).
    y_ref = (x @ fa.W + fa.b).flatten()
    assert y.shape == (batch * d_out,)
    assert jnp.allclose(y, y_ref, atol=1e-5, rtol=1e-5)

    # Mid-size: row-streaming path (W resident, x streams over an M grid).
    km, kwm, kbm = jax.random.split(jax.random.PRNGKey(1), 3)
    xm = jax.random.normal(km, (300, 256), dtype=jnp.float32)
    wm = jax.random.normal(kwm, (256, 256), dtype=jnp.float32) * 0.05
    bm = jax.random.normal(kbm, (1, 256), dtype=jnp.float32) * 0.05
    ym = _pallas_linear_rowstream(xm, wm, bm)
    jax.block_until_ready(ym)
    assert jnp.allclose(ym, xm @ wm + bm, atol=5e-4, rtol=5e-4)

    # Large: tiled M/N/K path (tiles divide the 128-aligned dims exactly;
    # bias-initialized K-resident output accumulator, no scratch).
    kx2, kw2, kb2 = jax.random.split(jax.random.PRNGKey(2), 3)
    big_m, big_k, big_n = 512, 384, 640
    xb = jax.random.normal(kx2, (big_m, big_k), dtype=jnp.float32)
    wb = jax.random.normal(kw2, (big_k, big_n), dtype=jnp.float32) * 0.05
    bb = jax.random.normal(kb2, (1, big_n), dtype=jnp.float32) * 0.05
    yb = _pallas_linear_tiled(xb, wb, bb)
    jax.block_until_ready(yb)
    assert jnp.allclose(yb, xb @ wb + bb, atol=5e-4, rtol=5e-4)

    print("KERNEL_OK")
</pallas_src>

<mosaic_0001>
module attributes {stable_mosaic.version = 11 : i64} {
  func.func @_linear_resident_kernel(%arg0: memref<8x128xf32, #tpu.memory_space<vmem>>, %arg1: memref<128x128xf32, #tpu.memory_space<vmem>>, %arg2: memref<1x128xf32, #tpu.memory_space<vmem>>, %arg3: memref<8x128xf32, #tpu.memory_space<vmem>>) attributes {dimension_semantics = [], scalar_prefetch = 0 : i64, scratch_operands = 0 : i64, tpu.core_type = #tpu.core_type<tc>} {
    %c0 = arith.constant 0 : index
    %c0_0 = arith.constant 0 : index
    %0 = vector.load %arg0[%c0, %c0_0] : memref<8x128xf32, #tpu.memory_space<vmem>>, vector<8x128xf32>
    %c0_1 = arith.constant 0 : index
    %c0_2 = arith.constant 0 : index
    %1 = vector.load %arg1[%c0_1, %c0_2] : memref<128x128xf32, #tpu.memory_space<vmem>>, vector<128x128xf32>
    %cst = arith.constant dense<0.000000e+00> : vector<8x128xf32>
    %2 = tpu.matmul %0, %1, %cst {dimension_numbers = #tpu.dot_dimension_numbers<[1], [0], [0], [1], [0, 0, 1, 1], [], []>} : vector<8x128xf32>, vector<128x128xf32>, vector<8x128xf32> -> vector<8x128xf32>
    %c0_3 = arith.constant 0 : index
    %c0_4 = arith.constant 0 : index
    %3 = vector.load %arg2[%c0_3, %c0_4] : memref<1x128xf32, #tpu.memory_space<vmem>>, vector<1x128xf32>
    %4 = vector.broadcast %3 : vector<1x128xf32> to vector<8x128xf32>
    %5 = arith.addf %2, %4 : vector<8x128xf32>
    %c0_5 = arith.constant 0 : index
    %c0_6 = arith.constant 0 : index
    %6 = vector.load %arg3[%c0_5, %c0_6] : memref<8x128xf32, #tpu.memory_space<vmem>>, vector<8x128xf32>
    tpu.vector_store %arg3[%c0_5, %c0_6], %5 {strides = array<i32>} : memref<8x128xf32, #tpu.memory_space<vmem>>, vector<8x128xf32>,
    return
  }
}

</mosaic_0001>

<bundles_post_ra>
// kernel: tpu_custom_call.1
= control target key start
LH: loop header
LB: loop body
LE: loop exit
PB: predicated region body
PF: predicated region fallthrough
CT: control target
= control target key end

     0   :  { %8 = vsyncpa [#allocation3], 0  ;;  %s383_s0 = inlined_call_operand.hbm [shape: f32[8,128], index: 0, kind: input, shape index: {}]   ;;  %s384_s1 = inlined_call_operand.hbm [shape: f32[128,128], index: 1, kind: input, shape index: {}]   ;;  %s385_s2 = inlined_call_operand.vmem [shape: f32[1,128], index: 2, kind: input, shape index: {}]   ;;  %s386_s3 = inlined_call_operand.hbm [shape: f32[8,128], index: 3, kind: output, shape index: {}]  }
   0x1   :  { %9 = vsyncpa [#allocation6], 0 }
   0x2   :  { %10 = vsyncpa [#allocation4], 0  ;;  %s309_s12 = smov [#allocation2]   ;;  %s310_s14 = smov [#allocation5]  }
   0x3   :  { %s17_s13 = sshll.u32 %s309_s12, 4  ;;  %s26_s15 = sshll.u32 %s310_s14, 4  ;;  %s18_s13 = int_to_ptr.vmem [resolvable:$true] %s17_s13  ;;  %s337_s15 = int_to_ptr.vmem [resolvable:$true] %s26_s15 }
   0x4   :  { %s237_s18 = scalar_lea.hbm %s383_s0, 128 }
   0x5   :  { %p238_p0 = scmp.ne.s32.totalorder %s383_s0, %s237_s18  ;;  %p241_p1 = scmp.lt.u32.totalorder %s237_s18, %s383_s0 }
   0x7   :  { %p243_p2 = pnand %p241_p1, %p238_p0 }
   0x9   :  { %246 = shalt.err (!%p243_p2)
}
   0xa   :  { %s247_s23 = scalar_lea.vmem %s18_s13, 128  ;;  %p252_p4 = scmp.lt.s32.totalorder %s18_s13, %s18_s13 }
   0xb   :  { %p248_p3 = scmp.ne.s32.totalorder %s18_s13, %s247_s23  ;;  %p253_p5 = scmp.lt.s32.totalorder %s247_s23, %s247_s23 }
   0xd   :  { %p254_p6 = por %p253_p5, %p252_p4 }
   0xf   :  { %p255_p7 = pnand %p254_p6, %p248_p3 }
  0x11   :  { %258 = shalt.err (!%p255_p7)
}
  0x12   :  { %20 = dma.hbm_to_vmem [thread:$0]  %s383_s0, 128, %s18_s13, [#allocation3]  }
  0x13   :  { %s259_s28 = scalar_lea.hbm %s384_s1, 2048 }
  0x14   :  { %p260_p8 = scmp.ne.s32.totalorder %s384_s1, %s259_s28  ;;  %p263_p9 = scmp.lt.u32.totalorder %s259_s28, %s384_s1 }
  0x16   :  { %p265_p10 = pnand %p263_p9, %p260_p8 }
  0x18   :  { %268 = shalt.err (!%p265_p10)
}
  0x19   :  { %s269_s6 = scalar_lea.vmem %s337_s15, 2048  ;;  %p274_p12 = scmp.lt.s32.totalorder %s337_s15, %s337_s15 }
  0x1a   :  { %p270_p11 = scmp.ne.s32.totalorder %s337_s15, %s269_s6  ;;  %p275_p13 = scmp.lt.s32.totalorder %s269_s6, %s269_s6 }
  0x1c   :  { %p276_p0 = por %p275_p13, %p274_p12 }
  0x1e   :  { %p277_p1 = pnand %p276_p0, %p270_p11 }
  0x20   :  { %280 = shalt.err (!%p277_p1)
}
  0x21   :  { %s311_s0 = smov 128   ;;  %s312_s7 = smov 8  }
  0x22   :  { %32 = dma.hbm_to_vmem [thread:$0]  %s384_s1, 2048, %s337_s15, [#allocation6], %s311_s0, %s311_s0, %s312_s7  }
  0x23   :  { %303 = dma.done.wait [#allocation3], 128  }
  0x24   :  { %304 = vsyncadd [#allocation3], 4294967168 }
  0x25   :  { %305 = dma.done.wait [#allocation6], 2048  }
  0x26   :  { %306 = vsyncadd [#allocation6], 4294965248  ;;  %v313_v0 = vmov 0.0|0.0   ;;  %vm314_vm0 = vmmov 0   ;;  %v315_v1 = vmov 0.0   ;;  %v42_v2 = vld [vmem:[#allocation5] sm:$0xff] }
  0x27   :  { %205 = vmatprep.subr.bf16.mxu0 %v313_v0  ;;  %202 = vmatprep.mubr.msk.f32.mxu0 %vm314_vm0, %v315_v1  ;;  %v43_v3 = vld [vmem:[#allocation5 + $0x8] sm:$0xff]  ;;  %v44_v4 = vld [vmem:[#allocation5 + $0x10] sm:$0xff]  ;;  %v45_v6 = vld [vmem:[#allocation5 + $0x18] sm:$0xff]  ;;  %s316_s11 = smov [#allocation7]  }
  0x28   :  { %v206_v5 = vpack.c.bf16 %v43_v3, %v42_v2  ;;  %v209_v7 = vpack.c.bf16 %v45_v6, %v44_v4  ;;  %v46_v8 = vld [vmem:[#allocation5 + $0x20] sm:$0xff]  ;;  %v47_v9 = vld [vmem:[#allocation5 + $0x28] sm:$0xff]  ;;  %v48_v11 = vld [vmem:[#allocation5 + $0x30] sm:$0xff]  ;;  %s142_s12 = sshll.u32 %s316_s11, 4  ;;  %s143_s12 = int_to_ptr.vmem [resolvable:$true] %s142_s12 }
  0x29   :  { %v212_v10 = vpack.c.bf16 %v47_v9, %v46_v8  ;;  %v49_v12 = vld [vmem:[#allocation5 + $0x38] sm:$0xff]  ;;  %v50_v14 = vld [vmem:[#allocation5 + $0x40] sm:$0xff]  ;;  %v51_v15 = vld [vmem:[#allocation5 + $0x48] sm:$0xff]  ;;  %s281_s13 = scalar_lea.vmem %s143_s12, 128  ;;  %p286_p3 = scmp.lt.s32.totalorder %s143_s12, %s143_s12 }
  0x2a   :  { %207 = vmatpush3.bf16.msra.mxu0 %v206_v5  ;;  %v215_v13 = vpack.c.bf16 %v49_v12, %v48_v11  ;;  %v218_v16 = vpack.c.bf16 %v51_v15, %v50_v14  ;;  %v52_v17 = vld [vmem:[#allocation5 + $0x50] sm:$0xff]  ;;  %v53_v18 = vld [vmem:[#allocation5 + $0x58] sm:$0xff]  ;;  %v54_v20 = vld [vmem:[#allocation5 + $0x60] sm:$0xff]  ;;  %p282_p2 = scmp.ne.s32.totalorder %s143_s12, %s281_s13  ;;  %p287_p4 = scmp.lt.s32.totalorder %s281_s13, %s281_s13 }
  0x2b   :  { %208 = vmatprep.subr.bf16.mxu0 %v313_v0  ;;  %v221_v19 = vpack.c.bf16 %v53_v18, %v52_v17  ;;  %v55_v21 = vld [vmem:[#allocation5 + $0x68] sm:$0xff]  ;;  %v56_v23 = vld [vmem:[#allocation5 + $0x70] sm:$0xff]  ;;  %v57_v24 = vld [vmem:[#allocation5 + $0x78] sm:$0xff] }
  0x2c   :  { %v224_v22 = vpack.c.bf16 %v55_v21, %v54_v20  ;;  %v227_v25 = vpack.c.bf16 %v57_v24, %v56_v23  ;;  %v41_v26 = vld [vmem:[#allocation2] sm:$0xff]  ;;  %p288_p5 = por %p287_p4, %p286_p3 }
  0x2d   :  { %v152_v27 = vld [vmem:[%s385_s2] ss:$0 sm:$0xff] }
  0x2e   :  { %210 = vmatpush3.bf16.msra.mxu0 %v209_v7  ;;  %p289_p6 = pnand %p288_p5, %p282_p2 }
  0x2f   :  { %211 = vmatprep.subr.bf16.mxu0 %v313_v0 }
  0x32   :  { %213 = vmatpush3.bf16.msra.mxu0 %v212_v10 }
  0x33   :  { %214 = vmatprep.subr.bf16.mxu0 %v313_v0 }
  0x36   :  { %216 = vmatpush3.bf16.msra.mxu0 %v215_v13 }
  0x37   :  { %217 = vmatprep.subr.bf16.mxu0 %v313_v0 }
  0x3a   :  { %219 = vmatpush3.bf16.msra.mxu0 %v218_v16 }
  0x3b   :  { %220 = vmatprep.subr.bf16.mxu0 %v313_v0 }
  0x3e   :  { %222 = vmatpush3.bf16.msra.mxu0 %v221_v19 }
  0x3f   :  { %223 = vmatprep.subr.bf16.mxu0 %v313_v0 }
  0x42   :  { %225 = vmatpush3.bf16.msra.mxu0 %v224_v22 }
  0x43   :  { %226 = vmatprep.subr.bf16.mxu0 %v313_v0 }
  0x46   :  { %228 = vmatpush3.bf16.msra.mxu0 %v227_v25 }
  0x49   :  { %203 = vmatmul.mubr.f32.vlgmr.msra.gmra.mrb[0].mxu0 %v41_v26 }
 0x11c   :  { %v131_v28 = vpop.f32.mrb[0].mxu0 }
 0x11d   :  { %v132_v29 = vadd.f32 %v152_v27, %v131_v28  ;;  %v204_v30 = vpop.f32.mrb[1].mxu0 }
 0x11f   :  { %135 = vst [vmem:[#allocation7] sm:$0xff] %v132_v29 }
 0x120   :  { %292 = shalt.err (!%p289_p6)
}
 0x121   :  { %s293_s16 = scalar_lea.hbm %s386_s3, 128 }
 0x122   :  { %p294_p7 = scmp.ne.s32.totalorder %s386_s3, %s293_s16  ;;  %p297_p8 = scmp.lt.u32.totalorder %s293_s16, %s386_s3 }
 0x124   :  { %p299_p9 = pnand %p297_p8, %p294_p7 }
 0x126   :  { %302 = shalt.err (!%p299_p9)
}
 0x127   :  { %145 = dma.vmem_to_hbm [thread:$0]  %s143_s12, 128, %s386_s3, [#allocation4]  }
 0x128   :  { %307 = dma.done.wait [#allocation4], 128  }
 0x129   :  { %308 = vsyncadd [#allocation4], 4294967168 }
 0x12a   :  { %149 = vsyncpa [#allocation3], 1 }
 0x12b   :  { %150 = vsyncpa [#allocation6], 1 }
 0x12c   :  { %151 = vsyncpa [#allocation4], 1 }

</bundles_post_ra>
